<compile_context>
chip_gen: v7x
topology: tpu7x:2x2x1
jax: 0.10.0
libtpu: 0.0.40
codegen_flags: <defaults>
</compile_context>

<pallas_src>
import jax
import jax.numpy as jnp
from jax.experimental import pallas as pl
from jax.experimental.pallas import tpu as pltpu


def _fuse_block_kernel(x3_ref, x5_ref, x7_ref,
                       w3t_ref, w5t_ref, w7t_ref, bsum_ref,
                       wpt_ref, bp_ref,
                       out_ref):
    """One (batch, pixel-tile) block.

    Channels live on the sublane axis, pixels on the lane axis, so no
    NCHW<->NHWC transpose is needed and the output store is lane-dense.
    """
    x3 = x3_ref[0]                       # [C3, T]
    x5 = x5_ref[0]                       # [C5, T]
    x7 = x7_ref[0]                       # [C7, T]

    # Three BN-folded 1x1 convs in W^T @ X orientation -> [Cout, T].
    # (A single concatenated K=C3+C5+C7 matmul is possible, but the kernel is
    #  HBM-bound at these widths and an unaligned sublane concat buys little.)
    a = jnp.dot(w3t_ref[...], x3, preferred_element_type=jnp.float32)
    a = a + jnp.dot(w5t_ref[...], x5, preferred_element_type=jnp.float32)
    a = a + jnp.dot(w7t_ref[...], x7, preferred_element_type=jnp.float32)
    a = a + bsum_ref[...]                # [Cout, 1] bias, broadcast over lanes
    a = jnp.maximum(a, 0.0)              # ReLU

    # psi = sigmoid(BN(conv1x1(a))): [1, Cout] @ [Cout, T] -> lane-dense [1, T]
    logit = jnp.dot(wpt_ref[...], a, preferred_element_type=jnp.float32)
    logit = logit + bp_ref[0]            # scalar bias from SMEM
    psi = jax.nn.sigmoid(logit)          # [1, T]

    # Gate x3 by psi: sublane broadcast over C3, lane-dense store.
    out_ref[0] = (x3 * psi).astype(out_ref.dtype)


def _fold_bn(w, b, gamma, beta, mean, var, eps=1e-5):
    """Fold eval-mode BatchNorm into a 1x1 conv.

    w: [Cin, Cout], b: [Cout]. Returns folded (w', b')."""
    s = gamma / jnp.sqrt(var + eps)                             # [Cout]
    return w * s[None, :], b * s + beta - mean * s


def _pick_pixel_tile(P, bytes_per_pixel, *, max_tile=8192,
                     vmem_budget=8 * 1024 * 1024):
    """Largest lane-aligned pixel tile such that the double-buffered
    input+output working set stays under `vmem_budget` (conservative for
    v7x's 64 MiB VMEM), capped at `max_tile` and at what P actually needs."""
    t = max(128, min(max_tile, vmem_budget // max(bytes_per_pixel, 1)))
    t = (t // 128) * 128
    p_pad128 = ((P + 127) // 128) * 128
    return min(t, p_pad128)


def fuse_block_forward(t_conv3, t_conv5, t_conv7, params, *, max_tile=8192):
    """t_conv*: NCHW float32 tensors (same N, H, W; channels may differ).

    Returns out in NCHW, matching the PyTorch module's `t_conv3 * psi`."""
    N, C3, H, W = t_conv3.shape
    C5 = t_conv5.shape[1]
    C7 = t_conv7.shape[1]
    Cout = params["w3"].shape[1]
    P = H * W

    # NCHW -> (N, C, H*W): pure reshape, no transpose / extra HBM traffic.
    x3 = t_conv3.reshape(N, C3, P)
    x5 = t_conv5.reshape(N, C5, P)
    x7 = t_conv7.reshape(N, C7, P)

    # Fold BN (eval mode) into each conv; the three biases add, so combine.
    w3, b3 = _fold_bn(params["w3"], params["b3"], params["g3"], params["be3"],
                      params["m3"], params["v3"])
    w5, b5 = _fold_bn(params["w5"], params["b5"], params["g5"], params["be5"],
                      params["m5"], params["v5"])
    w7, b7 = _fold_bn(params["w7"], params["b7"], params["g7"], params["be7"],
                      params["m7"], params["v7"])
    wp, bp = _fold_bn(params["wp"], params["bp"], params["gp"], params["bep"],
                      params["mp"], params["vp"])

    # Transposed weights for the [C, pixels] layout (tiny, VMEM-resident).
    w3t = w3.T                                                  # [Cout, C3]
    w5t = w5.T                                                  # [Cout, C5]
    w7t = w7.T                                                  # [Cout, C7]
    wpt = wp.T                                                  # [1, Cout]
    bsum = (b3 + b5 + b7).reshape(Cout, 1)                      # [Cout, 1]
    bp = bp.reshape(1)                                          # SMEM scalar

    # Large pixel tiles: per-grid-step overhead amortized, VMEM-budgeted.
    bytes_per_pixel = 2 * (C3 + C5 + C7 + C3) * 4   # double-buffered f32 blocks
    tm = _pick_pixel_tile(P, bytes_per_pixel, max_tile=max_tile)
    num_tiles = pl.cdiv(P, tm)
    P_pad = num_tiles * tm
    if P_pad != P:
        pad = ((0, 0), (0, 0), (0, P_pad - P))      # ragged tail: pad + slice
        x3 = jnp.pad(x3, pad)
        x5 = jnp.pad(x5, pad)
        x7 = jnp.pad(x7, pad)

    x_spec = lambda C: pl.BlockSpec((1, C, tm), lambda n, i: (n, 0, i))
    w_spec = lambda r, c: pl.BlockSpec((r, c), lambda n, i: (0, 0))

    flops = 2 * N * P * (C3 + C5 + C7 + 1) * Cout
    bytes_accessed = 4 * N * P * (C3 + C5 + C7 + 2 * C3)

    # TODO(synk): optional bf16 I/O (cast x3/x5/x7 + output at the HBM
    # boundary) would halve HBM traffic further; kept f32 for bit-tight
    # parity with the eval-mode PyTorch reference.
    out = pl.pallas_call(
        _fuse_block_kernel,
        out_shape=jax.ShapeDtypeStruct((N, C3, P_pad), t_conv3.dtype),
        grid_spec=pltpu.PrefetchScalarGridSpec(
            num_scalar_prefetch=0,
            grid=(N, num_tiles),
            in_specs=[
                x_spec(C3), x_spec(C5), x_spec(C7),
                w_spec(Cout, C3), w_spec(Cout, C5), w_spec(Cout, C7),
                w_spec(Cout, 1),
                w_spec(1, Cout),
                pl.BlockSpec(memory_space=pltpu.MemorySpace.SMEM),
            ],
            out_specs=x_spec(C3),
        ),
        compiler_params=pltpu.CompilerParams(
            dimension_semantics=("parallel", "parallel"),
            vmem_limit_bytes=32 * 1024 * 1024),
        cost_estimate=pl.CostEstimate(
            flops=flops, transcendentals=N * P, bytes_accessed=bytes_accessed),
    )(x3, x5, x7, w3t, w5t, w7t, bsum, wpt, bp)

    if P_pad != P:
        out = out[:, :, :P]
    return out.reshape(N, C3, H, W)


def init_params(key, F_conv3, F_conv5, F_conv7, out_ch):
    """Deterministic synthetic parameters mirroring the module's __init__."""
    ks = jax.random.split(key, 8)

    def conv_bn(kw, kb, cin, cout):
        w = 0.1 * jax.random.normal(kw, (cin, cout), jnp.float32)
        b = 0.05 * jax.random.normal(kb, (cout,), jnp.float32)
        gamma = 1.0 + 0.1 * jnp.arange(cout, dtype=jnp.float32) / max(cout, 1)
        beta = 0.01 * jnp.arange(cout, dtype=jnp.float32)
        mean = jnp.zeros((cout,), jnp.float32)
        var = jnp.ones((cout,), jnp.float32)
        return w, b, gamma, beta, mean, var

    w3, b3, g3, be3, m3, v3 = conv_bn(ks[0], ks[1], F_conv3, out_ch)
    w5, b5, g5, be5, m5, v5 = conv_bn(ks[2], ks[3], F_conv5, out_ch)
    w7, b7, g7, be7, m7, v7 = conv_bn(ks[4], ks[5], F_conv7, out_ch)
    wp, bp, gp, bep, mp, vp = conv_bn(ks[6], ks[7], out_ch, 1)

    return dict(w3=w3, b3=b3, g3=g3, be3=be3, m3=m3, v3=v3,
                w5=w5, b5=b5, g5=g5, be5=be5, m5=m5, v5=v5,
                w7=w7, b7=b7, g7=g7, be7=be7, m7=m7, v7=v7,
                wp=wp, bp=bp, gp=gp, bep=bep, mp=mp, vp=vp)


def reference_forward(t3, t5, t7, params):
    """Pure-JAX reference matching eval-mode PyTorch semantics."""
    def conv_bn(x, w, b, g, be, m, v, eps=1e-5):
        # x: NCHW, w: [Cin, Cout]
        y = jnp.einsum("nchw,cd->ndhw", x, w) + b[None, :, None, None]
        s = g / jnp.sqrt(v + eps)
        return y * s[None, :, None, None] + (be - m * s)[None, :, None, None]

    c3 = conv_bn(t3, params["w3"], params["b3"], params["g3"], params["be3"],
                 params["m3"], params["v3"])
    c5 = conv_bn(t5, params["w5"], params["b5"], params["g5"], params["be5"],
                 params["m5"], params["v5"])
    c7 = conv_bn(t7, params["w7"], params["b7"], params["g7"], params["be7"],
                 params["m7"], params["v7"])
    psi = jnp.maximum(c3 + c5 + c7, 0.0)
    psi = conv_bn(psi, params["wp"], params["bp"], params["gp"], params["bep"],
                  params["mp"], params["vp"])
    psi = jax.nn.sigmoid(psi)
    return t3 * psi


if __name__ == "__main__":
    key = jax.random.PRNGKey(0)
    k1, k2, k3, kp = jax.random.split(key, 4)

    N, H, W = 2, 16, 16
    F_conv3, F_conv5, F_conv7, out_ch = 4, 6, 8, 8

    t_conv3 = jax.random.normal(k1, (N, F_conv3, H, W), jnp.float32)
    t_conv5 = jax.random.normal(k2, (N, F_conv5, H, W), jnp.float32)
    t_conv7 = jax.random.normal(k3, (N, F_conv7, H, W), jnp.float32)

    params = init_params(kp, F_conv3, F_conv5, F_conv7, out_ch)

    out = fuse_block_forward(t_conv3, t_conv5, t_conv7, params)
    out = jax.block_until_ready(out)

    ref = reference_forward(t_conv3, t_conv5, t_conv7, params)
    assert out.shape == (N, F_conv3, H, W)
    assert jnp.allclose(out, ref, atol=1e-4, rtol=1e-4), (
        float(jnp.max(jnp.abs(out - ref))))

    print("KERNEL_OK")
</pallas_src>

<mosaic_0001>
module attributes {stable_mosaic.version = 11 : i64} {
  func.func @_fuse_block_kernel(%arg0: i32, %arg1: i32, %arg2: memref<1x4x256xf32, #tpu.memory_space<vmem>>, %arg3: memref<1x6x256xf32, #tpu.memory_space<vmem>>, %arg4: memref<1x8x256xf32, #tpu.memory_space<vmem>>, %arg5: memref<8x4xf32, #tpu.memory_space<vmem>>, %arg6: memref<8x6xf32, #tpu.memory_space<vmem>>, %arg7: memref<8x8xf32, #tpu.memory_space<vmem>>, %arg8: memref<8x1xf32, #tpu.memory_space<vmem>>, %arg9: memref<1x8xf32, #tpu.memory_space<vmem>>, %arg10: memref<1xf32, #tpu.memory_space<smem>>, %arg11: memref<1x4x256xf32, #tpu.memory_space<vmem>>) attributes {dimension_semantics = [#tpu.dimension_semantics<parallel>, #tpu.dimension_semantics<parallel>], iteration_bounds = array<i64: 2, 1>, scalar_prefetch = 0 : i64, scratch_operands = 0 : i64, tpu.core_type = #tpu.core_type<tc>, window_params = [{transform_indices = @transform_0, window_bounds = array<i64: 1, 4, 256>}, {transform_indices = @transform_1, window_bounds = array<i64: 1, 6, 256>}, {transform_indices = @transform_2, window_bounds = array<i64: 1, 8, 256>}, {pipeline_mode = #tpu.pipeline_mode<synchronous>, transform_indices = @transform_3, window_bounds = array<i64: 8, 4>}, {pipeline_mode = #tpu.pipeline_mode<synchronous>, transform_indices = @transform_4, window_bounds = array<i64: 8, 6>}, {pipeline_mode = #tpu.pipeline_mode<synchronous>, transform_indices = @transform_5, window_bounds = array<i64: 8, 8>}, {pipeline_mode = #tpu.pipeline_mode<synchronous>, transform_indices = @transform_6, window_bounds = array<i64: 8, 1>}, {pipeline_mode = #tpu.pipeline_mode<synchronous>, transform_indices = @transform_7, window_bounds = array<i64: 1, 8>}, {transform_indices = @transform_8, window_bounds = array<i64: 1>}, {transform_indices = @transform_9, window_bounds = array<i64: 1, 4, 256>}]} {
    %c0 = arith.constant 0 : index
    %c0_0 = arith.constant 0 : index
    %c0_1 = arith.constant 0 : index
    %0 = vector.load %arg2[%c0, %c0_0, %c0_1] : memref<1x4x256xf32, #tpu.memory_space<vmem>>, vector<1x4x256xf32>
    %1 = vector.shape_cast %0 : vector<1x4x256xf32> to vector<4x256xf32>
    %c0_2 = arith.constant 0 : index
    %c0_3 = arith.constant 0 : index
    %c0_4 = arith.constant 0 : index
    %2 = vector.load %arg3[%c0_2, %c0_3, %c0_4] : memref<1x6x256xf32, #tpu.memory_space<vmem>>, vector<1x6x256xf32>
    %3 = vector.shape_cast %2 : vector<1x6x256xf32> to vector<6x256xf32>
    %c0_5 = arith.constant 0 : index
    %c0_6 = arith.constant 0 : index
    %c0_7 = arith.constant 0 : index
    %4 = vector.load %arg4[%c0_5, %c0_6, %c0_7] : memref<1x8x256xf32, #tpu.memory_space<vmem>>, vector<1x8x256xf32>
    %5 = vector.shape_cast %4 : vector<1x8x256xf32> to vector<8x256xf32>
    %c0_8 = arith.constant 0 : index
    %c0_9 = arith.constant 0 : index
    %6 = vector.load %arg5[%c0_8, %c0_9] : memref<8x4xf32, #tpu.memory_space<vmem>>, vector<8x4xf32>
    %cst = arith.constant dense<0.000000e+00> : vector<8x256xf32>
    %7 = tpu.matmul %6, %1, %cst {dimension_numbers = #tpu.dot_dimension_numbers<[1], [0], [0], [1], [0, 0, 1, 1], [], []>} : vector<8x4xf32>, vector<4x256xf32>, vector<8x256xf32> -> vector<8x256xf32>
    %c0_10 = arith.constant 0 : index
    %c0_11 = arith.constant 0 : index
    %8 = vector.load %arg6[%c0_10, %c0_11] : memref<8x6xf32, #tpu.memory_space<vmem>>, vector<8x6xf32>
    %cst_12 = arith.constant dense<0.000000e+00> : vector<8x256xf32>
    %9 = tpu.matmul %8, %3, %cst_12 {dimension_numbers = #tpu.dot_dimension_numbers<[1], [0], [0], [1], [0, 0, 1, 1], [], []>} : vector<8x6xf32>, vector<6x256xf32>, vector<8x256xf32> -> vector<8x256xf32>
    %10 = arith.addf %7, %9 : vector<8x256xf32>
    %c0_13 = arith.constant 0 : index
    %c0_14 = arith.constant 0 : index
    %11 = vector.load %arg7[%c0_13, %c0_14] : memref<8x8xf32, #tpu.memory_space<vmem>>, vector<8x8xf32>
    %cst_15 = arith.constant dense<0.000000e+00> : vector<8x256xf32>
    %12 = tpu.matmul %11, %5, %cst_15 {dimension_numbers = #tpu.dot_dimension_numbers<[1], [0], [0], [1], [0, 0, 1, 1], [], []>} : vector<8x8xf32>, vector<8x256xf32>, vector<8x256xf32> -> vector<8x256xf32>
    %13 = arith.addf %10, %12 : vector<8x256xf32>
    %c0_16 = arith.constant 0 : index
    %c0_17 = arith.constant 0 : index
    %14 = vector.load %arg8[%c0_16, %c0_17] : memref<8x1xf32, #tpu.memory_space<vmem>>, vector<8x1xf32>
    %15 = vector.broadcast %14 : vector<8x1xf32> to vector<8x256xf32>
    %16 = arith.addf %13, %15 : vector<8x256xf32>
    %cst_18 = arith.constant 0.000000e+00 : f32
    %17 = vector.broadcast %cst_18 : f32 to vector<8x256xf32>
    %18 = arith.maximumf %16, %17 : vector<8x256xf32>
    %c0_19 = arith.constant 0 : index
    %c0_20 = arith.constant 0 : index
    %19 = vector.load %arg9[%c0_19, %c0_20] : memref<1x8xf32, #tpu.memory_space<vmem>>, vector<1x8xf32>
    %cst_21 = arith.constant dense<0.000000e+00> : vector<1x256xf32>
    %20 = tpu.matmul %19, %18, %cst_21 {dimension_numbers = #tpu.dot_dimension_numbers<[1], [0], [0], [1], [0, 0, 1, 1], [], []>} : vector<1x8xf32>, vector<8x256xf32>, vector<1x256xf32> -> vector<1x256xf32>
    %c0_22 = arith.constant 0 : index
    %21 = memref.load %arg10[%c0_22] : memref<1xf32, #tpu.memory_space<smem>>
    %22 = vector.broadcast %21 : f32 to vector<1x256xf32>
    %23 = arith.addf %20, %22 : vector<1x256xf32>
    %24 = arith.negf %23 : vector<1x256xf32>
    %25 = math.exp %24 : vector<1x256xf32>
    %cst_23 = arith.constant 1.000000e+00 : f32
    %26 = vector.broadcast %cst_23 : f32 to vector<1x256xf32>
    %27 = arith.addf %26, %25 : vector<1x256xf32>
    %28 = arith.divf %26, %27 : vector<1x256xf32>
    %29 = vector.broadcast %28 : vector<1x256xf32> to vector<4x256xf32>
    %30 = arith.mulf %1, %29 : vector<4x256xf32>
    %c0_24 = arith.constant 0 : index
    %c0_25 = arith.constant 0 : index
    %c0_26 = arith.constant 0 : index
    %31 = vector.load %arg11[%c0_24, %c0_25, %c0_26] : memref<1x4x256xf32, #tpu.memory_space<vmem>>, vector<1x4x256xf32>
    %32 = vector.shape_cast %31 : vector<1x4x256xf32> to vector<4x256xf32>
    %33 = vector.shape_cast %30 : vector<4x256xf32> to vector<1x4x256xf32>
    tpu.vector_store %arg11[%c0_24, %c0_25, %c0_26], %33 {strides = array<i32>} : memref<1x4x256xf32, #tpu.memory_space<vmem>>, vector<1x4x256xf32>,
    return
  }
  func.func @transform_0(%arg0: i32, %arg1: i32) -> (i32, i32, i32) {
    %c0_i32 = arith.constant 0 : i32
    %c0_i32_0 = arith.constant 0 : i32
    return %arg0, %c0_i32, %arg1 : i32, i32, i32
  }
  func.func @transform_1(%arg0: i32, %arg1: i32) -> (i32, i32, i32) {
    %c0_i32 = arith.constant 0 : i32
    %c0_i32_0 = arith.constant 0 : i32
    return %arg0, %c0_i32, %arg1 : i32, i32, i32
  }
  func.func @transform_2(%arg0: i32, %arg1: i32) -> (i32, i32, i32) {
    %c0_i32 = arith.constant 0 : i32
    %c0_i32_0 = arith.constant 0 : i32
    return %arg0, %c0_i32, %arg1 : i32, i32, i32
  }
  func.func @transform_3(%arg0: i32, %arg1: i32) -> (i32, i32) {
    %c0_i32 = arith.constant 0 : i32
    %c0_i32_0 = arith.constant 0 : i32
    %c0_i32_1 = arith.constant 0 : i32
    return %c0_i32, %c0_i32_0 : i32, i32
  }
  func.func @transform_4(%arg0: i32, %arg1: i32) -> (i32, i32) {
    %c0_i32 = arith.constant 0 : i32
    %c0_i32_0 = arith.constant 0 : i32
    %c0_i32_1 = arith.constant 0 : i32
    return %c0_i32, %c0_i32_0 : i32, i32
  }
  func.func @transform_5(%arg0: i32, %arg1: i32) -> (i32, i32) {
    %c0_i32 = arith.constant 0 : i32
    %c0_i32_0 = arith.constant 0 : i32
    %c0_i32_1 = arith.constant 0 : i32
    return %c0_i32, %c0_i32_0 : i32, i32
  }
  func.func @transform_6(%arg0: i32, %arg1: i32) -> (i32, i32) {
    %c0_i32 = arith.constant 0 : i32
    %c0_i32_0 = arith.constant 0 : i32
    %c0_i32_1 = arith.constant 0 : i32
    return %c0_i32, %c0_i32_0 : i32, i32
  }
  func.func @transform_7(%arg0: i32, %arg1: i32) -> (i32, i32) {
    %c0_i32 = arith.constant 0 : i32
    %c0_i32_0 = arith.constant 0 : i32
    %c0_i32_1 = arith.constant 0 : i32
    return %c0_i32, %c0_i32_0 : i32, i32
  }
  func.func @transform_8(%arg0: i32, %arg1: i32) -> i32 {
    %c0_i32 = arith.constant 0 : i32
    %c0_i32_0 = arith.constant 0 : i32
    return %c0_i32 : i32
  }
  func.func @transform_9(%arg0: i32, %arg1: i32) -> (i32, i32, i32) {
    %c0_i32 = arith.constant 0 : i32
    %c0_i32_0 = arith.constant 0 : i32
    return %arg0, %c0_i32, %arg1 : i32, i32, i32
  }
}

</mosaic_0001>

<bundles_post_ra>
// kernel: tpu_custom_call.1
= control target key start
LH: loop header
LB: loop body
LE: loop exit
PB: predicated region body
PF: predicated region fallthrough
CT: control target
= control target key end

     0   :  { %s1305_s0 = inlined_call_operand.vmem [shape: f32[2,4,256], index: 0, kind: input, shape index: {}]   ;;  %s1306_s1 = inlined_call_operand.vmem [shape: f32[2,6,256], index: 1, kind: input, shape index: {}]   ;;  %s1307_s2 = inlined_call_operand.vmem [shape: f32[2,8,256], index: 2, kind: input, shape index: {}]   ;;  %s1308_s3 = inlined_call_operand.vmem [shape: f32[8,4], index: 3, kind: input, shape index: {}]   ;;  %s1309_s4 = inlined_call_operand.vmem [shape: f32[8,6], index: 4, kind: input, shape index: {}]   ;;  %s1310_s5 = inlined_call_operand.vmem [shape: f32[8,8], index: 5, kind: input, shape index: {}]   ;;  %s1311_s6 = inlined_call_operand.vmem [shape: f32[8,1], index: 6, kind: input, shape index: {}]   ;;  %s1312_s7 = inlined_call_operand.vmem [shape: f32[1,8], index: 7, kind: input, shape index: {}]   ;;  %s1313_s8 = inlined_call_operand.<no memory space> [shape: f32[1], index: 8, kind: input, shape index: {}]   ;;  %s1314_s9 = inlined_call_operand.hbm [shape: f32[2,4,256], index: 9, kind: output, shape index: {}]  }
   0x1   :  { %14 = sst [smem:[#allocation2]] %s1313_s8 }
   0x2   :  { %15 = vsyncpa [#allocation4], 0 }
   0x3   :  { %17 = vsyncpa [#allocation4 + $0x1], 0  ;;  %s1164_s11 = smov 0   ;;  %s1166_s12 = smov 0  }
   0x4   :  { %s1168_s13 = smov 0   ;;  %s1170_s14 = smov 0  }
   0x5   :  { %s1172_s15 = smov 0   ;;  %s1174_s16 = smov 0  }
   0x6 LB: > { %s926_s8 = sadd.s32 4294967295, %s1106_s16   ;;  %s927_s17 = sadd.s32 4294967294, %s1106_s16   ;;  %s1106_s16 = sphi %s1174_s16, %s23_s16   ;;  %s1102_s15 = sphi %s1172_s15, %s1321_s15   ;;  %s1098_s14 = sphi %s1170_s14, %s1320_s14   ;;  %s1094_s13 = sphi %s1168_s13, %s1319_s13   ;;  %s1090_s12 = sphi %s1166_s12, %s1318_s12   ;;  %s1086_s11 = sphi %s1164_s11, %s1317_s11  }
   0x7   : > { %s35_s18 = sadd.s32 1, %s1102_s15  ;;  %s254_s19 = sadd.s32 1, %s1094_s13 }
   0x8   : > { %p37_p0 = scmp.ge.s32.totalorder %s35_s18, 2  ;;  %p264_p1 = scmp.ne.s32.totalorder %s1094_s13, %s1090_s12 }
   0x9   : > { %p265_p2 = scmp.eq.s32.totalorder %s926_s8, 1  ;;  %p270_p3 = scmp.ne.s32.totalorder %s1090_s12, %s1086_s11 }
   0xa   : > { %s1323_s18 = smov (%p37_p0, %s35_s18), 0  ;;  %p271_p5 = scmp.eq.s32.totalorder %s927_s17, 1 }
   0xb   : > { %p1204_p4 = por %p265_p2, %p264_p1  ;;  %s249_s21 = ssub.s32 %s1102_s15, %s1323_s18 }
   0xc   : > { %p930_p6 = scmp.ge.s32.totalorder %s1106_s16, 1  ;;  %p252_p7 = scmp.eq.s32.totalorder %s249_s21, 0 }
   0xd   : > { %p1211_p8 = por %p271_p5, %p270_p3  ;;  %p346_p9 = scmp.lt.s32.totalorder %s1106_s16, 3 }
   0xe   : > { %s1217_s23 = scalar_select %p252_p7, %s1094_s13, %s254_s19  }
   0xf   : > { %p347_p10 = pnand %p930_p6, %p346_p9 }
  0x10   : > { %p405_p11 = scmp.lt.s32.totalorder (!%p347_p10), %s1098_s14, 1  ;;  %v1108_v0 = vmov (!%p347_p10), 0.0   ;;  %v684_v1 = vld [vmem:[%s1311_s6] sm:$0xff] (!%p347_p10)  ;;  %v1109_v2 = vmov (!%p347_p10), 0   ;;  %vm446_vm0 = vcmask (!%p347_p10), 1045504   ;;  %vm530_vm1 = vcmask (!%p347_p10), 1043456  }
  0x11   : > { %350 = sbr.rel (%p347_p10) target bundleno = 523 (0x20b), region = 56  ;;  %599 = vmatprep.mubr.f32.mxu0 (!%p347_p10), %v1108_v0  ;;  %517 = vmatprep.mubr.f32.mxu1 (!%p347_p10), %v1108_v0  ;;  %v441_v7 = vld [vmem:[%s1309_s4] sm:$0xff] (!%p347_p10)  ;;  %vm442_vm2 = vcmask (!%p347_p10), 48128   ;;  %vm526_vm3 = vcmask (!%p347_p10), 31744   ;;  %vm607_vm4 = vcmask (!%p347_p10), 64512   ;;  %v783_v35 = vlaneseq (!%p347_p10)  ;;  %s401_s21 = sand.u32 (!%p347_p10), 1, %s1090_s12  }
  0x12   : > { %1018 = vset.pattern.permute.xlu0 (!%p347_p10), %v1109_v2  ;;  %v440_v8 = vld [vmem:[%s1308_s3] sm:$0xff] (!%p347_p10)  ;;  %s931_s24 = sshll.u32 (!%p347_p10), %s401_s21, 3 }
  0x13   : > { %687 = vperm.xlu0 (!%p347_p10), %1018, %v684_v1   ;;  %v606_v11 = vld [vmem:[%s1310_s5] sm:$0xff] (!%p347_p10)  ;;  %v784_v36 = vshrl.u32 (!%p347_p10), %v783_v35, 7 }
  0x14   : > { %v694_v23 = vld [vmem:[%s1312_s7] sm:$0x1] (!%p347_p10) }
  0x15   : > { %v785_v37 = vsub.s32 (!%p347_p10), 0, %v784_v36 }
  0x18   : > { %s406_s26 = scalar_select %p405_p11, %s1098_s14, 1 }
  0x1a   : > { %s953_s27 = sshll.u32 %s406_s26, 3  ;;  %s954_s28 = sshll.u32 %s406_s26, 4 }
  0x1b   : > { %s412_s10 = scalar_lea.vmem %s1305_s0, %s953_s27  ;;  %s432_s19 = scalar_lea.vmem %s1307_s2, %s954_s28 }
  0x1c   : > { %v1230_v3 = vld [vmem:[%s412_s10] sm:$0xff]  ;;  %s422_s25 = scalar_lea.vmem %s1306_s1, %s954_s28  ;;  %v439_v9 = vld [vmem:[%s432_s19 + $0x8] sm:$0xff]  ;;  %s403_s26 = scalar_lea.vmem [#allocation3], %s931_s24 }
  0x1d   : > { %v525_v4 = vcombine.high %v1230_v3, %v1230_v3  ;;  %v437_v5 = vld [vmem:[%s422_s25 + $0x8] sm:$0x3f]  ;;  %v436_v6 = vld [vmem:[%s422_s25] sm:$0x3f]  ;;  %s956_s25 = sshll.u32 %s1098_s14, 7  ;;  %s814_s29 = sshll.u32 %s403_s26, 4  ;;  %s1260_s29 = int_to_ptr.vmem [resolvable:$true] %s814_s29 }
  0x1e   : > { %938 = vmatprep.subr.msk.mxu1 %vm446_vm0, %v437_v5  ;;  %v438_v10 = vld [vmem:[%s432_s19] sm:$0xff]  ;;  %s695_s19 = sld [smem:[#allocation2]]  ;;  %s1258_s28 = scalar_lea.hbm %s1314_s9, %s956_s25 }
  0x1f   : > { %941 = vmatprep.subr.msk.mxu0 %vm530_vm1, %v525_v4  ;;  %939 = vmatpush1.msk.msra.mxu1 %vm446_vm0, %v436_v6  ;;  %s798_s10 = scalar_lea.sflag [#allocation4], %s401_s21  ;;  %s1028_s8 = scalar_lea.vmem %s1260_s29, 128 }
  0x20   : > { %942 = vmatpush1.msk.msra.mxu0 %vm530_vm1, %v1230_v3  ;;  %940 = vmatmul.mubr.msk.f32.vlgmr.msra.gmra.mrb[0].mxu1 %vm442_vm2, %v441_v7  ;;  %p1029_p12 = scmp.ne.s32.totalorder %s1260_s29, %s1028_s8  ;;  %s1110_s14 = smov [#allocation3]  }
  0x21   : > { %943 = vmatmul.mubr.msk.f32.vlgmr.msra.gmra.mrb[0].mxu0 %vm526_vm3, %v440_v8  ;;  %611 = vmatprep.subr.mxu0 %v439_v9  ;;  %s1032_s17 = sshll.u32 %s1110_s14, 4  ;;  %s1033_s17 = int_to_ptr.vmem [resolvable:$false] %s1032_s17 }
  0x22   : > { %612 = vmatpush1.msra.mxu0 %v438_v10  ;;  %675 = vmatprep.mubr.f32.mxu0 %v1108_v0  ;;  %p1030_p13 = pnand %p1029_p12, %p1204_p4  ;;  %p1035_p1 = scmp.lt.s32.totalorder %s1260_s29, %s1033_s17 }
  0x23   : > { %764 = vmatprep.mubr.f32.mxu1 %v1108_v0 }
  0x24   : > { %v696_v24 = vstv %s695_s19  ;;  %p1031_p0 = pneg %p1030_p13  ;;  %s1034_s19 = scalar_lea.vmem %s1033_s17, 256 }
  0x25   : > { %p1036_p2 = scmp.lt.s32.totalorder %s1034_s19, %s1028_s8 }
  0x27   : > { %p1037_p3 = por %p1036_p2, %p1035_p1 }
  0x29   : > { %944 = vmatmul.mubr.msk.f32.vlgmr.msra.gmra.mrb[0].mxu0 %vm607_vm4, %v606_v11  ;;  %p1038_p5 = pnand %p1037_p3, %p1031_p0 }
  0x92   : > { %v688_v15 = vpop.permute.xlu0 %687 }
  0xf3   : > { %v519_v12 = vpop.f32.mrb[0].mxu1 }
  0xf4   : > { %v521_v13 = vpop.f32.mrb[1].mxu1 }
  0xfc   : > { %v677_v14 = vpop.f32.mrb[0].mxu0 }
  0xfd   : > { %v957_v16 = vadd.f32 %v677_v14, %v519_v12  ;;  %v679_v17 = vpop.f32.mrb[1].mxu0 }
  0xfe   : > { %v958_v18 = vadd.f32 %v679_v17, %v521_v13 }
  0xff   : > { %v690_v19 = vadd.f32 %v957_v16, %v688_v15 }
 0x100   : > { %v691_v20 = vadd.f32 %v958_v18, %v688_v15 }
 0x101   : > { %v692_v22 = vmax.f32 %v690_v19, 0.0 }
 0x102   : > { %v693_v21 = vmax.f32 %v691_v20, 0.0 }
 0x104   : > { %700 = vmatprep.subr.mxu1 %v693_v21 }
 0x105   : > { %701 = vmatpush1.msra.mxu1 %v692_v22 }
 0x106   : > { %945 = vmatmul.mubr.msk.f32.vlgmr.msra.gmra.mrb[2].mxu1 %vm607_vm4, %v694_v23 }
 0x1d9   : > { %v766_v25 = vpop.f32.mrb[2].mxu1 }
 0x1da   : > { %v767_v26 = vadd.f32 %v766_v25, %v696_v24  ;;  %v768_v27 = vpop.f32.mrb[3].mxu1 }
 0x1db   : > { %v769_v28 = vadd.f32 %v768_v27, %v696_v24 }
 0x1dc   : > { %v946_v29 = vmul.f32 -1.442695, %v767_v26 }
 0x1dd   : > { %v947_v30 = vmul.f32 -1.442695, %v769_v28 }
 0x1de   : > { %1020 = vpow2.f32 %v946_v29 }
 0x1df   : > { %1022 = vpow2.f32 %v947_v30 }
 0x1e8   : > { %v1021_v31 = vpop.eup %1020 }
 0x1e9   : > { %v1023_v32 = vpop.eup %1022  ;;  %v777_v33 = vadd.f32 1.0, %v1021_v31 }
 0x1ea   : > { %v778_v34 = vadd.f32 1.0, %v1023_v32 }
 0x1eb   : > { %1024 = vrcp.f32 %v777_v33 }
 0x1ec   : > { %1026 = vrcp.f32 %v778_v34 }
 0x1f5   : > { %v1025_v38 = vpop.eup %1024 }
 0x1f6   : > { %v1027_v39 = vpop.eup %1026  ;;  %v786_v40 = vrot.slane %v1025_v38, %v785_v37 }
 0x1f7   : > { %v790_v41 = vrot.slane %v1027_v39, %v785_v37 }
 0x1f9   : > { %v793_v42 = vcombine.low %v786_v40, %v790_v41 }
 0x1fb   : > { %v795_v43 = vmul.f32 %v793_v42, %v1230_v3 }
 0x1fd   : > { %796 = vst [vmem:[%s403_s26] sm:$0xff] %v795_v43 }
 0x1fe   : > { %1041 = shalt.err (!%p1038_p5)
}
 0x1ff   : > { %s1042_s21 = scalar_lea.hbm %s1258_s28, 128  ;;  %s1046_s26 = scalar_lea.hbm %s1314_s9, 256 }
 0x200   : > { %p1043_p6 = scmp.ne.s32.totalorder %s1258_s28, %s1042_s21  ;;  %p1047_p10 = scmp.lt.u32.totalorder %s1258_s28, %s1314_s9 }
 0x201   : > { %p1048_p11 = scmp.lt.u32.totalorder %s1046_s26, %s1042_s21  ;;  %p1050_p13 = scmp.lt.u32.totalorder %s1042_s21, %s1258_s28 }
 0x202   : > { %p1044_p7 = pnand %p1043_p6, %p1204_p4 }
 0x203   : > { %p1049_p12 = por %p1048_p11, %p1047_p10 }
 0x204   : > { %p1045_p9 = pneg %p1044_p7 }
 0x205   : > { %p1051_p0 = por %p1050_p13, %p1049_p12 }
 0x207   : > { %p1052_p1 = pnand %p1051_p0, %p1045_p9 }
 0x209   : > { %1055 = shalt.err (!%p1052_p1)
}
 0x20a   : > { %961 = dma.vmem_to_hbm [thread:$0]  (%p1204_p4), %s1260_s29, 128, %s1258_s28, %s798_s10  }
 0x20b PF: > { %p967_p2 = scmp.ge.s32.totalorder %s1106_s16, 2  ;;  %s826_s8 = sand.u32 1, %s1086_s11  }
 0x20c   : > { %s827_s14 = scalar_lea.sflag [#allocation4], %s826_s8 }
 0x20d   : > { %p964_p3 = pnand %p967_p2, %p1211_p8 }
 0x20f   : > { %1081 = dma.done.wait (!%p964_p3), %s827_s14, 128  }
 0x210   : > { %1083 = vsyncadd (!%p964_p3), %s827_s14, 4294967168  ;;  %s23_s16 = sadd.s32 1, %s1106_s16   ;;  %s1317_s11 = smov %s1090_s12 }
 0x211   : > { %p20_p5 = scmp.ge.s32.totalorder %s23_s16, 4   ;;  %s1318_s12 = smov %s1094_s13 }
 0x212   : > { %s1319_s13 = smov %s1217_s23  ;;  %s1320_s14 = smov %s1102_s15 }
 0x213   : > { %s1321_s15 = smov %s1323_s18  ;;  %22 = sbr.rel (!%p20_p5) target bundleno = 6 (0x6), region = 97 }
 0x21a   :  { %832 = vsyncpa [#allocation4], 1 }
 0x21b   :  { %834 = vsyncpa [#allocation4 + $0x1], 1 }

</bundles_post_ra>
